<compile_context>
chip_gen: v7x
topology: tpu7x:2x2x1
jax: 0.10.0
libtpu: 0.0.40
codegen_flags: <defaults>
</compile_context>

<pallas_src>
import functools

import numpy as np

import jax
import jax.numpy as jnp
from jax.experimental import pallas as pl
from jax.experimental.pallas import tpu as pltpu


HIDDEN = 512   # nn.Linear(1, 512)
LANE = 128     # lane-tile width for the chunked N axis
K_PAD = 8      # layer-1 contraction depth, zero-padded to one sublane group


def _cpb_mlp_kernel(rel_ref, w1b1_ref, w2_ref, out_ref, *, lane_tile, num_chunks):
    """rel_aug: (8, N_pad)   w1b1: (512, 8)   w2: (n_heads_pad, 512)
    out: (n_heads_pad, N_pad).

    Processes the N axis in `lane_tile`-wide chunks so the (512, N) hidden
    activation never exceeds one vreg-file worth of live values.
    """

    def chunk(c, carry):
        start = pl.multiple_of(c * lane_tile, lane_tile)
        # (8, lane_tile): row 0 = rel coords, row 1 = ones, rows 2..7 = zeros.
        aug = rel_ref[:, pl.ds(start, lane_tile)]
        # Layer 1 on the MXU with the bias folded into the K dimension:
        #   hidden[f, r] = relu(w1[f] * rel[r] + b1[f])      -> (512, lane_tile)
        hidden = jnp.maximum(
            jnp.dot(w1b1_ref[...], aug, preferred_element_type=jnp.float32), 0.0
        )
        # Layer 2 on the MXU, w2 in native (n_heads, 512) layout; output chunk
        # is lane-dense along N.
        logits = jnp.dot(w2_ref[...], hidden, preferred_element_type=jnp.float32)
        # 16 * sigmoid(.)  (sigmoid -> EUP slot), aligned unmasked lane store.
        out_ref[:, pl.ds(start, lane_tile)] = 16.0 * jax.nn.sigmoid(logits)
        return carry

    # Short fixed trip count (2 at h=16): unroll for LLO scheduler visibility.
    jax.lax.fori_loop(0, num_chunks, chunk, 0, unroll=True)


@functools.partial(jax.jit, static_argnums=(0, 1, 2))
def continuous_position_bias_1d(h: int, h2: int, n_heads: int, w1, b1, w2):
    """Pallas equivalent of ContinuousPositionBias1D.forward(h, h2).

    w1: (512, 1), b1: (512,), w2: (n_heads, 512)  (native PyTorch Linear
    layouts).  Returns (1, n_heads, h, h) float32.
    Precondition: h >= 2 (the PyTorch reference divides by zero at h == 1).
    """
    del h2  # redundant in the reference implementation as well
    n = h * h
    n_pad = ((n + LANE - 1) // LANE) * LANE          # lane-pad N to 128
    nh_pad = ((n_heads + 7) // 8) * 8                # sublane-pad heads to 8
    denom = float(max(h - 1, 1))                     # guard h==1 (ref -> div0)

    # rel[i*h + j] = (j - i) / (h - 1)  == relative_coords[coords[i, j]]
    # (same integer numerator / same denominator as the reference gather, so
    # bit-identical; no in-kernel gather needed).  Constant-folded under jit.
    idx = jnp.arange(h, dtype=jnp.float32)
    rel = ((idx[None, :] - idx[:, None]) / denom).reshape(n)

    # Augmented coordinates: row 0 = rel, row 1 = ones (bias), rows 2..7 = 0.
    rel_aug = jnp.zeros((K_PAD, n_pad), jnp.float32)
    rel_aug = rel_aug.at[0, :n].set(rel)
    rel_aug = rel_aug.at[1, :n].set(1.0)
    # Padded columns (>= n) are all-zero -> hidden = 0 -> out = 8, discarded.

    # Folded layer-1 weights: [w1 | b1 | 0...0] -> (512, 8).
    w1b1 = jnp.zeros((HIDDEN, K_PAD), jnp.float32)
    w1b1 = w1b1.at[:, 0].set(jnp.asarray(w1, jnp.float32).reshape(HIDDEN))
    w1b1 = w1b1.at[:, 1].set(jnp.asarray(b1, jnp.float32).reshape(HIDDEN))

    # Layer-2 weights in native (n_heads, 512) layout, sublane-padded heads.
    w2p = jnp.zeros((nh_pad, HIDDEN), jnp.float32)
    w2p = w2p.at[:n_heads, :].set(jnp.asarray(w2, jnp.float32))

    num_chunks = n_pad // LANE
    kernel = functools.partial(
        _cpb_mlp_kernel, lane_tile=LANE, num_chunks=num_chunks
    )

    out = pl.pallas_call(
        kernel,
        out_shape=jax.ShapeDtypeStruct((nh_pad, n_pad), jnp.float32),
        in_specs=[
            pl.BlockSpec(memory_space=pltpu.MemorySpace.VMEM),  # rel_aug (8, N_pad)
            pl.BlockSpec(memory_space=pltpu.MemorySpace.VMEM),  # w1b1    (512, 8)
            pl.BlockSpec(memory_space=pltpu.MemorySpace.VMEM),  # w2      (nh_pad, 512)
        ],
        out_specs=pl.BlockSpec(memory_space=pltpu.MemorySpace.VMEM),
    )(rel_aug, w1b1, w2p)

    # (nh_pad, N_pad) -> (n_heads, h*h) -> (1, n_heads, h, h): slice + reshape,
    # no transpose needed.
    return out[:n_heads, :n].reshape(n_heads, h, h)[None]


def _reference_np(h: int, n_heads: int, w1, b1, w2):
    """float64 NumPy transcription of the PyTorch forward, for verification."""
    w1 = np.asarray(w1, np.float64).reshape(HIDDEN, 1)
    b1 = np.asarray(b1, np.float64).reshape(HIDDEN)
    w2 = np.asarray(w2, np.float64)
    relative_coords = np.arange(-(h - 1), h, dtype=np.float64) / (h - 1)
    coords = np.arange(h, dtype=np.float64)
    coords = coords[None, :] - coords[:, None] + (h - 1)          # (h, h)
    x = relative_coords[:, None]                                  # (2h-1, 1)
    hidden = np.maximum(x @ w1.T + b1, 0.0)                       # (2h-1, 512)
    rpm = 16.0 / (1.0 + np.exp(-(hidden @ w2.T)))                 # (2h-1, n_heads)
    biases = rpm[coords.astype(np.int64)]                         # (h, h, n_heads)
    return np.transpose(biases, (2, 0, 1))[None]                  # (1, nH, h, h)


if __name__ == "__main__":
    n_heads = 8
    h = 16
    h2 = 16  # redundant arg, mirrors the PyTorch signature

    # Deterministic synthetic parameters (PyTorch Linear layouts).
    key = jax.random.PRNGKey(0)
    k1, k2, k3 = jax.random.split(key, 3)
    w1 = jax.random.normal(k1, (HIDDEN, 1), jnp.float32) * 0.5        # Linear(1, 512).weight
    b1 = jax.random.normal(k2, (HIDDEN,), jnp.float32) * 0.1          # Linear(1, 512).bias
    w2 = jax.random.normal(k3, (n_heads, HIDDEN), jnp.float32) * 0.05  # Linear(512, n_heads).weight

    out = continuous_position_bias_1d(h, h2, n_heads, w1, b1, w2)
    out = jax.block_until_ready(out)

    assert out.shape == (1, n_heads, h, h), out.shape
    assert out.dtype == jnp.float32

    ref = _reference_np(h, n_heads, np.asarray(w1), np.asarray(b1), np.asarray(w2))
    out_np = np.asarray(out, np.float64)
    max_err = float(np.max(np.abs(out_np - ref)))
    # Layer-2 contraction order differs from the reference (w2 @ h vs h @ w2.T),
    # so allow a modest f32 tolerance against the float64 gold reference.
    assert np.allclose(out_np, ref, atol=1e-3, rtol=1e-3), max_err

    print("KERNEL_OK")
</pallas_src>

<mosaic_0001>
module attributes {stable_mosaic.version = 11 : i64} {
  func.func @_cpb_mlp_kernel(%arg0: memref<8x256xf32, #tpu.memory_space<vmem>>, %arg1: memref<512x8xf32, #tpu.memory_space<vmem>>, %arg2: memref<8x512xf32, #tpu.memory_space<vmem>>, %arg3: memref<8x256xf32, #tpu.memory_space<vmem>>) attributes {dimension_semantics = [], scalar_prefetch = 0 : i64, scratch_operands = 0 : i64, tpu.core_type = #tpu.core_type<tc>} {
    %c0_i32 = arith.constant 0 : i32
    %c128_i32 = arith.constant 128 : i32
    %0 = arith.muli %c0_i32, %c128_i32 : i32
    %1 = tpu.assume_multiple %0, 128 : i32
    %c0 = arith.constant 0 : index
    %2 = arith.index_cast %1 : i32 to index
    %3 = vector.load %arg0[%c0, %2] : memref<8x256xf32, #tpu.memory_space<vmem>>, vector<8x128xf32>
    %c0_0 = arith.constant 0 : index
    %c0_1 = arith.constant 0 : index
    %4 = vector.load %arg1[%c0_0, %c0_1] : memref<512x8xf32, #tpu.memory_space<vmem>>, vector<512x8xf32>
    %cst = arith.constant dense<0.000000e+00> : vector<512x128xf32>
    %5 = tpu.matmul %4, %3, %cst {dimension_numbers = #tpu.dot_dimension_numbers<[1], [0], [0], [1], [0, 0, 1, 1], [], []>} : vector<512x8xf32>, vector<8x128xf32>, vector<512x128xf32> -> vector<512x128xf32>
    %cst_2 = arith.constant 0.000000e+00 : f32
    %6 = vector.broadcast %cst_2 : f32 to vector<512x128xf32>
    %7 = arith.maximumf %5, %6 : vector<512x128xf32>
    %c0_3 = arith.constant 0 : index
    %c0_4 = arith.constant 0 : index
    %8 = vector.load %arg2[%c0_3, %c0_4] : memref<8x512xf32, #tpu.memory_space<vmem>>, vector<8x512xf32>
    %cst_5 = arith.constant dense<0.000000e+00> : vector<8x128xf32>
    %9 = tpu.matmul %8, %7, %cst_5 {dimension_numbers = #tpu.dot_dimension_numbers<[1], [0], [0], [1], [0, 0, 1, 1], [], []>} : vector<8x512xf32>, vector<512x128xf32>, vector<8x128xf32> -> vector<8x128xf32>
    %10 = arith.negf %9 : vector<8x128xf32>
    %11 = math.exp %10 : vector<8x128xf32>
    %cst_6 = arith.constant 1.000000e+00 : f32
    %12 = vector.broadcast %cst_6 : f32 to vector<8x128xf32>
    %13 = arith.addf %12, %11 : vector<8x128xf32>
    %14 = arith.divf %12, %13 : vector<8x128xf32>
    %cst_7 = arith.constant 1.600000e+01 : f32
    %15 = vector.broadcast %cst_7 : f32 to vector<8x128xf32>
    %16 = arith.mulf %15, %14 : vector<8x128xf32>
    %c0_8 = arith.constant 0 : index
    %17 = arith.index_cast %1 : i32 to index
    %18 = vector.load %arg3[%c0_8, %17] : memref<8x256xf32, #tpu.memory_space<vmem>>, vector<8x128xf32>
    tpu.vector_store %arg3[%c0_8, %17], %16 {strides = array<i32>} : memref<8x256xf32, #tpu.memory_space<vmem>>, vector<8x128xf32>,
    %c1_i32 = arith.constant 1 : i32
    %c128_i32_9 = arith.constant 128 : i32
    %19 = arith.muli %c1_i32, %c128_i32_9 : i32
    %20 = tpu.assume_multiple %19, 128 : i32
    %c0_10 = arith.constant 0 : index
    %21 = arith.index_cast %20 : i32 to index
    %22 = vector.load %arg0[%c0_10, %21] : memref<8x256xf32, #tpu.memory_space<vmem>>, vector<8x128xf32>
    %c0_11 = arith.constant 0 : index
    %c0_12 = arith.constant 0 : index
    %23 = vector.load %arg1[%c0_11, %c0_12] : memref<512x8xf32, #tpu.memory_space<vmem>>, vector<512x8xf32>
    %cst_13 = arith.constant dense<0.000000e+00> : vector<512x128xf32>
    %24 = tpu.matmul %23, %22, %cst_13 {dimension_numbers = #tpu.dot_dimension_numbers<[1], [0], [0], [1], [0, 0, 1, 1], [], []>} : vector<512x8xf32>, vector<8x128xf32>, vector<512x128xf32> -> vector<512x128xf32>
    %cst_14 = arith.constant 0.000000e+00 : f32
    %25 = vector.broadcast %cst_14 : f32 to vector<512x128xf32>
    %26 = arith.maximumf %24, %25 : vector<512x128xf32>
    %c0_15 = arith.constant 0 : index
    %c0_16 = arith.constant 0 : index
    %27 = vector.load %arg2[%c0_15, %c0_16] : memref<8x512xf32, #tpu.memory_space<vmem>>, vector<8x512xf32>
    %cst_17 = arith.constant dense<0.000000e+00> : vector<8x128xf32>
    %28 = tpu.matmul %27, %26, %cst_17 {dimension_numbers = #tpu.dot_dimension_numbers<[1], [0], [0], [1], [0, 0, 1, 1], [], []>} : vector<8x512xf32>, vector<512x128xf32>, vector<8x128xf32> -> vector<8x128xf32>
    %29 = arith.negf %28 : vector<8x128xf32>
    %30 = math.exp %29 : vector<8x128xf32>
    %cst_18 = arith.constant 1.000000e+00 : f32
    %31 = vector.broadcast %cst_18 : f32 to vector<8x128xf32>
    %32 = arith.addf %31, %30 : vector<8x128xf32>
    %33 = arith.divf %31, %32 : vector<8x128xf32>
    %cst_19 = arith.constant 1.600000e+01 : f32
    %34 = vector.broadcast %cst_19 : f32 to vector<8x128xf32>
    %35 = arith.mulf %34, %33 : vector<8x128xf32>
    %c0_20 = arith.constant 0 : index
    %36 = arith.index_cast %20 : i32 to index
    %37 = vector.load %arg3[%c0_20, %36] : memref<8x256xf32, #tpu.memory_space<vmem>>, vector<8x128xf32>
    tpu.vector_store %arg3[%c0_20, %36], %35 {strides = array<i32>} : memref<8x256xf32, #tpu.memory_space<vmem>>, vector<8x128xf32>,
    %c2_i32 = arith.constant 2 : i32
    return
  }
}

</mosaic_0001>

<bundles_post_ra>
// kernel: continuous_position_bias_1d.1
= control target key start
LH: loop header
LB: loop body
LE: loop exit
PB: predicated region body
PF: predicated region fallthrough
CT: control target
= control target key end

     0   :  { %vm79_vm0 = vcmask 64512   ;;  %s3103_s0 = inlined_call_operand.vmem [shape: f32[8,256], index: 0, kind: input, shape index: {}]   ;;  %s3104_s1 = inlined_call_operand.vmem [shape: f32[512,8], index: 1, kind: input, shape index: {}]   ;;  %s3105_s2 = inlined_call_operand.vmem [shape: f32[8,512], index: 2, kind: input, shape index: {}]   ;;  %s3106_s3 = inlined_call_operand.vmem [shape: f32[8,256], index: 3, kind: output, shape index: {}]  }
   0x1   :  { %v14_v0 = vld [vmem:[%s3103_s0] sm:$0xff]  ;;  %v2502_v2 = vld [vmem:[%s3104_s1 + $0x8] sm:$0xff]  ;;  %v2509_v3 = vld [vmem:[%s3104_s1 + $0x10] sm:$0xff] }
   0x2   :  { %v2497_v1 = vld [vmem:[%s3104_s1] sm:$0xff]  ;;  %2139 = vmatprep.subr.mxu0 %v14_v0  ;;  %v2518_v4 = vld [vmem:[%s3104_s1 + $0x18] sm:$0xff]  ;;  %v2532_v6 = vld [vmem:[%s3104_s1 + $0x28] sm:$0xff] }
   0x3   :  { %2141 = vmatprep.mubr.msk.f32.mxu0 %vm79_vm0, %v2497_v1  ;;  %2140 = vmatpush3.msra.mxu0 %v14_v0  ;;  %v2523_v5 = vld [vmem:[%s3104_s1 + $0x20] sm:$0xff]  ;;  %v2537_v7 = vld [vmem:[%s3104_s1 + $0x30] sm:$0xff]  ;;  %v2546_v8 = vld [vmem:[%s3104_s1 + $0x38] sm:$0xff] }
   0x4   :  { %2142 = vmatmul.mubr.msk.f32.vlgmr.msra.gmra.mrb[0].mxu0 %vm79_vm0, %v2502_v2  ;;  %v2551_v9 = vld [vmem:[%s3104_s1 + $0x40] sm:$0xff]  ;;  %v2560_v10 = vld [vmem:[%s3104_s1 + $0x48] sm:$0xff]  ;;  %v2565_v11 = vld [vmem:[%s3104_s1 + $0x50] sm:$0xff] }
   0x5   :  { %2144 = vmatprep.mubr.msk.f32.mxu0 %vm79_vm0, %v2509_v3  ;;  %v2574_v12 = vld [vmem:[%s3104_s1 + $0x58] sm:$0xff]  ;;  %v2579_v13 = vld [vmem:[%s3104_s1 + $0x60] sm:$0xff]  ;;  %v2588_v14 = vld [vmem:[%s3104_s1 + $0x68] sm:$0xff] }
   0x6   :  { %v2593_v15 = vld [vmem:[%s3104_s1 + $0x70] sm:$0xff]  ;;  %v2602_v16 = vld [vmem:[%s3104_s1 + $0x78] sm:$0xff]  ;;  %v2607_v17 = vld [vmem:[%s3104_s1 + $0x80] sm:$0xff] }
   0x7   :  { %v2616_v18 = vld [vmem:[%s3104_s1 + $0x88] sm:$0xff]  ;;  %v2621_v19 = vld [vmem:[%s3104_s1 + $0x90] sm:$0xff]  ;;  %v2630_v20 = vld [vmem:[%s3104_s1 + $0x98] sm:$0xff] }
   0x8   :  { %2145 = vmatmul.mubr.msk.f32.gmra.mrb[2].mxu0 %vm79_vm0, %v2518_v4  ;;  %v2635_v21 = vld [vmem:[%s3104_s1 + $0xa0] sm:$0xff]  ;;  %v2644_v22 = vld [vmem:[%s3104_s1 + $0xa8] sm:$0xff]  ;;  %v2649_v23 = vld [vmem:[%s3104_s1 + $0xb0] sm:$0xff] }
   0x9   :  { %2147 = vmatprep.mubr.msk.f32.mxu0 %vm79_vm0, %v2523_v5  ;;  %v2658_v24 = vld [vmem:[%s3104_s1 + $0xb8] sm:$0xff]  ;;  %v2663_v25 = vld [vmem:[%s3104_s1 + $0xc0] sm:$0xff]  ;;  %v2672_v26 = vld [vmem:[%s3104_s1 + $0xc8] sm:$0xff] }
   0xa   :  { %v2677_v27 = vld [vmem:[%s3104_s1 + $0xd0] sm:$0xff]  ;;  %v2686_v28 = vld [vmem:[%s3104_s1 + $0xd8] sm:$0xff]  ;;  %v2691_v29 = vld [vmem:[%s3104_s1 + $0xe0] sm:$0xff] }
   0xb   :  { %v2700_v30 = vld [vmem:[%s3104_s1 + $0xe8] sm:$0xff]  ;;  %v2705_v31 = vld [vmem:[%s3104_s1 + $0xf0] sm:$0xff]  ;;  %v2714_v32 = vld [vmem:[%s3104_s1 + $0xf8] sm:$0xff] }
   0xc   :  { %2148 = vmatmul.mubr.msk.f32.gmra.mrb[4].mxu0 %vm79_vm0, %v2532_v6  ;;  %v2719_v33 = vld [vmem:[%s3104_s1 + $0x100] sm:$0xff]  ;;  %v2728_v34 = vld [vmem:[%s3104_s1 + $0x108] sm:$0xff]  ;;  %v2733_v35 = vld [vmem:[%s3104_s1 + $0x110] sm:$0xff] }
   0xd   :  { %2150 = vmatprep.mubr.msk.f32.mxu0 %vm79_vm0, %v2537_v7  ;;  %v2742_v36 = vld [vmem:[%s3104_s1 + $0x118] sm:$0xff]  ;;  %v2747_v37 = vld [vmem:[%s3104_s1 + $0x120] sm:$0xff]  ;;  %v2756_v38 = vld [vmem:[%s3104_s1 + $0x128] sm:$0xff] }
   0xe   :  { %3136 = vst [vmem:[#allocation2_spill] sm:$0xff] %v2756_v38  ;;  %v2761_v39 = vld [vmem:[%s3104_s1 + $0x130] sm:$0xff]  ;;  %v2770_v40 = vld [vmem:[%s3104_s1 + $0x138] sm:$0xff]  ;;  %v2775_v41 = vld [vmem:[%s3104_s1 + $0x140] sm:$0xff] }
   0xf   :  { %3137 = vst [vmem:[#allocation3_spill] sm:$0xff] %v2761_v39  ;;  %3138 = vst [vmem:[#allocation4_spill] sm:$0xff] %v2770_v40  ;;  %v2784_v42 = vld [vmem:[%s3104_s1 + $0x148] sm:$0xff]  ;;  %v2789_v43 = vld [vmem:[%s3104_s1 + $0x150] sm:$0xff] }
  0x10   :  { %2151 = vmatmul.mubr.msk.f32.gmra.mrb[6].mxu0 %vm79_vm0, %v2546_v8  ;;  %3139 = vst [vmem:[#allocation5_spill] sm:$0xff] %v2775_v41  ;;  %3140 = vst [vmem:[#allocation6_spill] sm:$0xff] %v2784_v42  ;;  %v2798_v44 = vld [vmem:[%s3104_s1 + $0x158] sm:$0xff]  ;;  %v2803_v45 = vld [vmem:[%s3104_s1 + $0x160] sm:$0xff] }
  0x11   :  { %2153 = vmatprep.mubr.msk.f32.mxu0 %vm79_vm0, %v2551_v9  ;;  %3141 = vst [vmem:[#allocation7_spill] sm:$0xff] %v2789_v43  ;;  %3142 = vst [vmem:[#allocation8_spill] sm:$0xff] %v2798_v44  ;;  %v2812_v46 = vld [vmem:[%s3104_s1 + $0x168] sm:$0xff]  ;;  %v2817_v47 = vld [vmem:[%s3104_s1 + $0x170] sm:$0xff] }
  0x12   :  { %3143 = vst [vmem:[#allocation9_spill] sm:$0xff] %v2803_v45  ;;  %3144 = vst [vmem:[#allocation10_spill] sm:$0xff] %v2812_v46  ;;  %v2826_v48 = vld [vmem:[%s3104_s1 + $0x178] sm:$0xff]  ;;  %v2831_v49 = vld [vmem:[%s3104_s1 + $0x180] sm:$0xff] }
  0x13   :  { %3145 = vst [vmem:[#allocation11_spill] sm:$0xff] %v2817_v47  ;;  %3146 = vst [vmem:[#allocation12_spill] sm:$0xff] %v2826_v48  ;;  %v2840_v50 = vld [vmem:[%s3104_s1 + $0x188] sm:$0xff]  ;;  %v2845_v51 = vld [vmem:[%s3104_s1 + $0x190] sm:$0xff] }
  0x14   :  { %2154 = vmatmul.mubr.msk.f32.gmra.mrb[8].mxu0 %vm79_vm0, %v2560_v10  ;;  %3147 = vst [vmem:[#allocation13_spill] sm:$0xff] %v2831_v49  ;;  %3148 = vst [vmem:[#allocation14_spill] sm:$0xff] %v2840_v50  ;;  %v2854_v52 = vld [vmem:[%s3104_s1 + $0x198] sm:$0xff]  ;;  %v2859_v53 = vld [vmem:[%s3104_s1 + $0x1a0] sm:$0xff] }
  0x15   :  { %2156 = vmatprep.mubr.msk.f32.mxu0 %vm79_vm0, %v2565_v11  ;;  %3149 = vst [vmem:[#allocation15_spill] sm:$0xff] %v2845_v51  ;;  %3150 = vst [vmem:[#allocation16_spill] sm:$0xff] %v2854_v52  ;;  %v2868_v54 = vld [vmem:[%s3104_s1 + $0x1a8] sm:$0xff]  ;;  %v2873_v55 = vld [vmem:[%s3104_s1 + $0x1b0] sm:$0xff] }
  0x16   :  { %3151 = vst [vmem:[#allocation17_spill] sm:$0xff] %v2859_v53  ;;  %3152 = vst [vmem:[#allocation18_spill] sm:$0xff] %v2868_v54  ;;  %v2882_v56 = vld [vmem:[%s3104_s1 + $0x1b8] sm:$0xff]  ;;  %v2887_v57 = vld [vmem:[%s3104_s1 + $0x1c0] sm:$0xff] }
  0x17   :  { %3153 = vst [vmem:[#allocation19_spill] sm:$0xff] %v2873_v55  ;;  %3154 = vst [vmem:[#allocation20_spill] sm:$0xff] %v2882_v56  ;;  %v2896_v58 = vld [vmem:[%s3104_s1 + $0x1c8] sm:$0xff]  ;;  %v2901_v59 = vld [vmem:[%s3104_s1 + $0x1d0] sm:$0xff] }
  0x18   :  { %2157 = vmatmul.mubr.msk.f32.gmra.mrb[10].mxu0 %vm79_vm0, %v2574_v12  ;;  %3155 = vst [vmem:[#allocation21_spill] sm:$0xff] %v2887_v57  ;;  %3156 = vst [vmem:[#allocation22_spill] sm:$0xff] %v2896_v58  ;;  %v2910_v60 = vld [vmem:[%s3104_s1 + $0x1d8] sm:$0xff]  ;;  %v2915_v61 = vld [vmem:[%s3104_s1 + $0x1e0] sm:$0xff] }
  0x19   :  { %2159 = vmatprep.mubr.msk.f32.mxu0 %vm79_vm0, %v2579_v13  ;;  %3157 = vst [vmem:[#allocation23_spill] sm:$0xff] %v2901_v59  ;;  %3158 = vst [vmem:[#allocation24_spill] sm:$0xff] %v2910_v60  ;;  %v2924_v62 = vld [vmem:[%s3104_s1 + $0x1e8] sm:$0xff]  ;;  %v2929_v63 = vld [vmem:[%s3104_s1 + $0x1f0] sm:$0xff] }
  0x1a   :  { %3159 = vst [vmem:[#allocation25_spill] sm:$0xff] %v2915_v61  ;;  %3160 = vst [vmem:[#allocation26_spill] sm:$0xff] %v2924_v62  ;;  %v2938_v0 = vld [vmem:[%s3104_s1 + $0x1f8] sm:$0xff] }
  0x1b   :  { %3161 = vst [vmem:[#allocation27_spill] sm:$0xff] %v2929_v63  ;;  %3162 = vst [vmem:[#allocation28_spill] sm:$0xff] %v2938_v0 }
  0x1c   :  { %2160 = vmatmul.mubr.msk.f32.gmra.mrb[12].mxu0 %vm79_vm0, %v2588_v14 }
  0x1d   :  { %2162 = vmatprep.mubr.msk.f32.mxu0 %vm79_vm0, %v2593_v15 }
  0x20   :  { %2163 = vmatmul.mubr.msk.f32.gmra.mrb[14].mxu0 %vm79_vm0, %v2602_v16 }
  0x21   :  { %2165 = vmatprep.mubr.msk.f32.mxu0 %vm79_vm0, %v2607_v17 }
  0x24   :  { %2166 = vmatmul.mubr.msk.f32.gmra.mrb[16].mxu0 %vm79_vm0, %v2616_v18 }
  0x25   :  { %2168 = vmatprep.mubr.msk.f32.mxu0 %vm79_vm0, %v2621_v19 }
  0x28   :  { %2169 = vmatmul.mubr.msk.f32.gmra.mrb[18].mxu0 %vm79_vm0, %v2630_v20 }
  0x29   :  { %2171 = vmatprep.mubr.msk.f32.mxu0 %vm79_vm0, %v2635_v21 }
  0x2c   :  { %2172 = vmatmul.mubr.msk.f32.gmra.mrb[20].mxu0 %vm79_vm0, %v2644_v22 }
  0x2d   :  { %2174 = vmatprep.mubr.msk.f32.mxu0 %vm79_vm0, %v2649_v23 }
  0x30   :  { %2175 = vmatmul.mubr.msk.f32.gmra.mrb[22].mxu0 %vm79_vm0, %v2658_v24 }
  0x31   :  { %2177 = vmatprep.mubr.msk.f32.mxu0 %vm79_vm0, %v2663_v25 }
  0x34   :  { %2178 = vmatmul.mubr.msk.f32.gmra.mrb[24].mxu0 %vm79_vm0, %v2672_v26 }
  0x35   :  { %2180 = vmatprep.mubr.msk.f32.mxu0 %vm79_vm0, %v2677_v27 }
  0x38   :  { %2181 = vmatmul.mubr.msk.f32.gmra.mrb[26].mxu0 %vm79_vm0, %v2686_v28 }
  0x39   :  { %2183 = vmatprep.mubr.msk.f32.mxu0 %vm79_vm0, %v2691_v29 }
  0x3c   :  { %2184 = vmatmul.mubr.msk.f32.gmra.mrb[28].mxu0 %vm79_vm0, %v2700_v30 }
  0x3d   :  { %2186 = vmatprep.mubr.msk.f32.mxu0 %vm79_vm0, %v2705_v31 }
  0x40   :  { %2187 = vmatmul.mubr.msk.f32.gmra.mrb[30].mxu0 %vm79_vm0, %v2714_v32 }
  0x41   :  { %2189 = vmatprep.mubr.msk.f32.mxu0 %vm79_vm0, %v2719_v33 }
  0x44   :  { %2190 = vmatmul.mubr.msk.f32.gmra.mrb[32].mxu0 %vm79_vm0, %v2728_v34 }
  0x45   :  { %2192 = vmatprep.mubr.msk.f32.mxu0 %vm79_vm0, %v2733_v35 }
  0x48   :  { %2193 = vmatmul.mubr.msk.f32.gmra.mrb[34].mxu0 %vm79_vm0, %v2742_v36 }
  0x49   :  { %2195 = vmatprep.mubr.msk.f32.mxu0 %vm79_vm0, %v2747_v37 }
  0x4c   :  { %2196 = vmatmul.mubr.msk.f32.gmra.mrb[36].mxu0 %vm79_vm0, %v2756_v38 }
  0x4d   :  { %2198 = vmatprep.mubr.msk.f32.mxu0 %vm79_vm0, %v2761_v39 }
  0x50   :  { %2199 = vmatmul.mubr.msk.f32.gmra.mrb[38].mxu0 %vm79_vm0, %v2770_v40 }
  0x51   :  { %2201 = vmatprep.mubr.msk.f32.mxu0 %vm79_vm0, %v2775_v41 }
  0x54   :  { %2202 = vmatmul.mubr.msk.f32.gmra.mrb[40].mxu0 %vm79_vm0, %v2784_v42 }
  0x55   :  { %2204 = vmatprep.mubr.msk.f32.mxu0 %vm79_vm0, %v2789_v43 }
  0x58   :  { %2205 = vmatmul.mubr.msk.f32.gmra.mrb[42].mxu0 %vm79_vm0, %v2798_v44 }
  0x59   :  { %2207 = vmatprep.mubr.msk.f32.mxu0 %vm79_vm0, %v2803_v45 }
  0x5c   :  { %2208 = vmatmul.mubr.msk.f32.gmra.mrb[44].mxu0 %vm79_vm0, %v2812_v46 }
  0x5d   :  { %2210 = vmatprep.mubr.msk.f32.mxu0 %vm79_vm0, %v2817_v47 }
  0x60   :  { %2211 = vmatmul.mubr.msk.f32.gmra.mrb[46].mxu0 %vm79_vm0, %v2826_v48 }
  0x61   :  { %2213 = vmatprep.mubr.msk.f32.mxu0 %vm79_vm0, %v2831_v49 }
  0x64   :  { %2214 = vmatmul.mubr.msk.f32.gmra.mrb[48].mxu0 %vm79_vm0, %v2840_v50 }
  0x65   :  { %2216 = vmatprep.mubr.msk.f32.mxu0 %vm79_vm0, %v2845_v51 }
  0x68   :  { %2217 = vmatmul.mubr.msk.f32.gmra.mrb[50].mxu0 %vm79_vm0, %v2854_v52 }
  0x69   :  { %2219 = vmatprep.mubr.msk.f32.mxu0 %vm79_vm0, %v2859_v53 }
  0x6c   :  { %2220 = vmatmul.mubr.msk.f32.gmra.mrb[52].mxu0 %vm79_vm0, %v2868_v54 }
  0x6d   :  { %2222 = vmatprep.mubr.msk.f32.mxu0 %vm79_vm0, %v2873_v55 }
  0x70   :  { %2223 = vmatmul.mubr.msk.f32.gmra.mrb[54].mxu0 %vm79_vm0, %v2882_v56 }
  0x71   :  { %2225 = vmatprep.mubr.msk.f32.mxu0 %vm79_vm0, %v2887_v57 }
  0x74   :  { %2226 = vmatmul.mubr.msk.f32.gmra.mrb[56].mxu0 %vm79_vm0, %v2896_v58 }
  0x75   :  { %2228 = vmatprep.mubr.msk.f32.mxu0 %vm79_vm0, %v2901_v59 }
  0x78   :  { %2229 = vmatmul.mubr.msk.f32.gmra.mrb[58].mxu0 %vm79_vm0, %v2910_v60 }
  0x79   :  { %2231 = vmatprep.mubr.msk.f32.mxu0 %vm79_vm0, %v2915_v61  ;;  %v722_v61 = vld [vmem:[%s3105_s2 + $0x8] sm:$0xff] }
  0x7a   :  { %789 = vmatprep.mubr.f32.mxu1 %v722_v61 }
  0x7c   :  { %2232 = vmatmul.mubr.msk.f32.gmra.mrb[60].mxu0 %vm79_vm0, %v2924_v62 }
  0x7d   :  { %2234 = vmatprep.mubr.msk.f32.mxu0 %vm79_vm0, %v2929_v63 }
  0x80   :  { %2235 = vmatmul.mubr.msk.f32.gmra.mrb[62].mxu0 %vm79_vm0, %v2938_v0 }
  0x81   :  { %1648 = vmatprep.mubr.f32.mxu0 %v722_v61 }
  0xd7   :  { %v2143_v60 = vpop.f32.mrb[0].mxu0 }
  0xd8   :  { %v658_v59 = vmax.f32 %v2143_v60, 0.0  ;;  %v338_v62 = vpop.f32.mrb[1].mxu0 }
  0xd9   :  { %v657_v58 = vmax.f32 %v338_v62, 0.0 }
  0xdb   :  { %v2146_v57 = vpop.f32.mrb[2].mxu0  ;;  %v2337_v63 = vpack.c.bf16 %v658_v59, %v657_v58 }
  0xdc   :  { %v660_v56 = vmax.f32 %v2146_v57, 0.0  ;;  %v348_v55 = vpop.f32.mrb[3].mxu0 }
  0xdd   :  { %v659_v54 = vmax.f32 %v348_v55, 0.0 }
  0xdf   :  { %v2341_v53 = vpack.c.bf16 %v660_v56, %v659_v54  ;;  %v2149_v52 = vpop.f32.mrb[4].mxu0 }
  0xe0   :  { %v662_v51 = vmax.f32 %v2149_v52, 0.0  ;;  %v358_v50 = vpop.f32.mrb[5].mxu0 }
  0xe1   :  { %v661_v0 = vmax.f32 %v358_v50, 0.0 }
  0xe3   :  { %v2345_v49 = vpack.c.bf16 %v662_v51, %v661_v0  ;;  %v2152_v48 = vpop.f32.mrb[6].mxu0 }
  0xe4   :  { %v664_v47 = vmax.f32 %v2152_v48, 0.0  ;;  %v368_v46 = vpop.f32.mrb[7].mxu0 }
  0xe5   :  { %v663_v45 = vmax.f32 %v368_v46, 0.0 }
  0xe7   :  { %v2349_v61 = vpack.c.bf16 %v664_v47, %v663_v45  ;;  %v2155_v44 = vpop.f32.mrb[8].mxu0 }
  0xe8   :  { %v666_v60 = vmax.f32 %v2155_v44, 0.0  ;;  %v378_v43 = vpop.f32.mrb[9].mxu0 }
  0xe9   :  { %v665_v62 = vmax.f32 %v378_v43, 0.0 }
  0xeb   :  { %v2353_v42 = vpack.c.bf16 %v666_v60, %v665_v62  ;;  %v2158_v58 = vpop.f32.mrb[10].mxu0 }
  0xec   :  { %v668_v57 = vmax.f32 %v2158_v58, 0.0  ;;  %v388_v59 = vpop.f32.mrb[11].mxu0 }
  0xed   :  { %v667_v55 = vmax.f32 %v388_v59, 0.0 }
  0xef   :  { %v2357_v54 = vpack.c.bf16 %v668_v57, %v667_v55  ;;  %v2161_v56 = vpop.f32.mrb[12].mxu0 }
  0xf0   :  { %v670_v52 = vmax.f32 %v2161_v56, 0.0  ;;  %v398_v41 = vpop.f32.mrb[13].mxu0 }
  0xf1   :  { %v669_v50 = vmax.f32 %v398_v41, 0.0 }
  0xf3   :  { %v2361_v51 = vpack.c.bf16 %v670_v52, %v669_v50  ;;  %v2164_v0 = vpop.f32.mrb[14].mxu0 }
  0xf4   :  { %v672_v48 = vmax.f32 %v2164_v0, 0.0  ;;  %v408_v40 = vpop.f32.mrb[15].mxu0 }
  0xf5   :  { %v671_v46 = vmax.f32 %v408_v40, 0.0 }
  0xf7   :  { %v2365_v45 = vpack.c.bf16 %v672_v48, %v671_v46  ;;  %v2167_v47 = vpop.f32.mrb[16].mxu0 }
  0xf8   :  { %v674_v44 = vmax.f32 %v2167_v47, 0.0  ;;  %v418_v39 = vpop.f32.mrb[17].mxu0 }
  0xf9   :  { %v673_v43 = vmax.f32 %v418_v39, 0.0 }
  0xfb   :  { %v2170_v60 = vpop.f32.mrb[18].mxu0  ;;  %v2335_v62 = vpack.c.bf16 %v674_v44, %v673_v43 }
  0xfc   :  { %v676_v58 = vmax.f32 %v2170_v60, 0.0  ;;  %v428_v38 = vpop.f32.mrb[19].mxu0 }
  0xfd   :  { %v675_v59 = vmax.f32 %v428_v38, 0.0  ;;  %2336 = vmatprep.subr.bf16.mxu1 %v2335_v62 }
  0xfe   :  { %2338 = vmatpush3.bf16.msra.mxu1 %v2337_v63 }
  0xff   :  { %v2339_v57 = vpack.c.bf16 %v676_v58, %v675_v59  ;;  %v2173_v55 = vpop.f32.mrb[20].mxu0 }
 0x100   :  { %v678_v41 = vmax.f32 %v2173_v55, 0.0  ;;  %v438_v56 = vpop.f32.mrb[21].mxu0 }
 0x101   :  { %v677_v52 = vmax.f32 %v438_v56, 0.0  ;;  %2340 = vmatprep.subr.bf16.mxu1 %v2339_v57 }
 0x102   :  { %2342 = vmatpush3.bf16.msra.mxu1 %v2341_v53 }
 0x103   :  { %v2343_v40 = vpack.c.bf16 %v678_v41, %v677_v52  ;;  %v2176_v50 = vpop.f32.mrb[22].mxu0 }
 0x104   :  { %v680_v0 = vmax.f32 %v2176_v50, 0.0  ;;  %v448_v48 = vpop.f32.mrb[23].mxu0 }
 0x105   :  { %v679_v46 = vmax.f32 %v448_v48, 0.0  ;;  %2344 = vmatprep.subr.bf16.mxu1 %v2343_v40 }
 0x106   :  { %2346 = vmatpush3.bf16.msra.mxu1 %v2345_v49 }
 0x107   :  { %v2347_v39 = vpack.c.bf16 %v680_v0, %v679_v46  ;;  %v2179_v47 = vpop.f32.mrb[24].mxu0 }
 0x108   :  { %v682_v44 = vmax.f32 %v2179_v47, 0.0  ;;  %v458_v38 = vpop.f32.mrb[25].mxu0 }
 0x109   :  { %v681_v43 = vmax.f32 %v458_v38, 0.0  ;;  %2348 = vmatprep.subr.bf16.mxu1 %v2347_v39  ;;  %v2953_v38 = vld [vmem:[%s3105_s2 + $0x18] sm:$0xff] }
 0x10a   :  { %2350 = vmatpush3.bf16.msra.mxu1 %v2349_v61  ;;  %3164 = vst [vmem:[#allocation30_spill] sm:$0xff] %v2953_v38 }
 0x10b   :  { %v2351_v63 = vpack.c.bf16 %v682_v44, %v681_v43  ;;  %v2182_v60 = vpop.f32.mrb[26].mxu0 }
 0x10c   :  { %v684_v62 = vmax.f32 %v2182_v60, 0.0  ;;  %v468_v58 = vpop.f32.mrb[27].mxu0 }
 0x10d   :  { %v683_v59 = vmax.f32 %v468_v58, 0.0  ;;  %2352 = vmatprep.subr.bf16.mxu1 %v2351_v63 }
 0x10e   :  { %2354 = vmatpush3.bf16.msra.mxu1 %v2353_v42  ;;  %v2948_v42 = vld [vmem:[%s3105_s2] sm:$0xff] }
 0x10f   :  { %v2355_v53 = vpack.c.bf16 %v684_v62, %v683_v59  ;;  %v2185_v57 = vpop.f32.mrb[28].mxu0  ;;  %3163 = vst [vmem:[#allocation29_spill] sm:$0xff] %v2948_v42 }
 0x110   :  { %v686_v55 = vmax.f32 %v2185_v57, 0.0  ;;  %v478_v41 = vpop.f32.mrb[29].mxu0 }
 0x111   :  { %v685_v56 = vmax.f32 %v478_v41, 0.0  ;;  %2356 = vmatprep.subr.bf16.mxu1 %v2355_v53 }
 0x112   :  { %2358 = vmatpush3.bf16.msra.mxu1 %v2357_v54 }
 0x113   :  { %v2359_v49 = vpack.c.bf16 %v686_v55, %v685_v56  ;;  %v2188_v52 = vpop.f32.mrb[30].mxu0 }
 0x114   :  { %v688_v40 = vmax.f32 %v2188_v52, 0.0  ;;  %v488_v50 = vpop.f32.mrb[31].mxu0 }
 0x115   :  { %v687_v0 = vmax.f32 %v488_v50, 0.0  ;;  %2360 = vmatprep.subr.bf16.mxu1 %v2359_v49 }
 0x116   :  { %2362 = vmatpush3.bf16.msra.mxu1 %v2361_v51 }
 0x117   :  { %v2363_v61 = vpack.c.bf16 %v688_v40, %v687_v0  ;;  %v2191_v48 = vpop.f32.mrb[32].mxu0 }
 0x118   :  { %v690_v46 = vmax.f32 %v2191_v48, 0.0  ;;  %v498_v39 = vpop.f32.mrb[33].mxu0 }
 0x119   :  { %v689_v47 = vmax.f32 %v498_v39, 0.0  ;;  %2364 = vmatprep.subr.bf16.mxu1 %v2363_v61 }
 0x11a   :  { %2366 = vmatpush3.bf16.msra.mxu1 %v2365_v45 }
 0x11b   :  { %v2369_v54 = vpack.c.bf16 %v690_v46, %v689_v47  ;;  %v2194_v44 = vpop.f32.mrb[34].mxu0 }
 0x11c   :  { %v692_v51 = vmax.f32 %v2194_v44, 0.0  ;;  %v508_v43 = vpop.f32.mrb[35].mxu0 }
 0x11d   :  { %v691_v63 = vmax.f32 %v508_v43, 0.0  ;;  %790 = vmatmul.mubr.f32.vlgmr.msra.gmra.mrb[0].mxu1 %v2948_v42 }
 0x11e   :  { %859 = vmatprep.mubr.f32.mxu1 %v2953_v38 }
 0x11f   :  { %v2373_v45 = vpack.c.bf16 %v692_v51, %v691_v63  ;;  %v2197_v60 = vpop.f32.mrb[36].mxu0 }
 0x120   :  { %v694_v62 = vmax.f32 %v2197_v60, 0.0  ;;  %v518_v58 = vpop.f32.mrb[37].mxu0 }
 0x121   :  { %v693_v59 = vmax.f32 %v518_v58, 0.0 }
 0x123   :  { %v2377_v53 = vpack.c.bf16 %v694_v62, %v693_v59  ;;  %v2200_v57 = vpop.f32.mrb[38].mxu0 }
 0x124   :  { %v696_v55 = vmax.f32 %v2200_v57, 0.0  ;;  %v528_v41 = vpop.f32.mrb[39].mxu0 }
 0x125   :  { %v695_v56 = vmax.f32 %v528_v41, 0.0 }
 0x127   :  { %v2381_v49 = vpack.c.bf16 %v696_v55, %v695_v56  ;;  %v2203_v52 = vpop.f32.mrb[40].mxu0 }
 0x128   :  { %v698_v40 = vmax.f32 %v2203_v52, 0.0  ;;  %v538_v50 = vpop.f32.mrb[41].mxu0 }
 0x129   :  { %v697_v0 = vmax.f32 %v538_v50, 0.0 }
 0x12b   :  { %v2385_v61 = vpack.c.bf16 %v698_v40, %v697_v0  ;;  %v2206_v48 = vpop.f32.mrb[42].mxu0 }
 0x12c   :  { %v700_v46 = vmax.f32 %v2206_v48, 0.0  ;;  %v548_v39 = vpop.f32.mrb[43].mxu0 }
 0x12d   :  { %v699_v47 = vmax.f32 %v548_v39, 0.0 }
 0x12f   :  { %v2389_v44 = vpack.c.bf16 %v700_v46, %v699_v47  ;;  %v2209_v51 = vpop.f32.mrb[44].mxu0 }
 0x130   :  { %v702_v43 = vmax.f32 %v2209_v51, 0.0  ;;  %v558_v63 = vpop.f32.mrb[45].mxu0 }
 0x131   :  { %v701_v60 = vmax.f32 %v558_v63, 0.0 }
 0x133   :  { %v2393_v62 = vpack.c.bf16 %v702_v43, %v701_v60  ;;  %v2212_v58 = vpop.f32.mrb[46].mxu0 }
 0x134   :  { %v704_v59 = vmax.f32 %v2212_v58, 0.0  ;;  %v568_v57 = vpop.f32.mrb[47].mxu0 }
 0x135   :  { %v703_v41 = vmax.f32 %v568_v57, 0.0 }
 0x137   :  { %v2397_v55 = vpack.c.bf16 %v704_v59, %v703_v41  ;;  %v2215_v56 = vpop.f32.mrb[48].mxu0 }
 0x138   :  { %v706_v52 = vmax.f32 %v2215_v56, 0.0  ;;  %v578_v38 = vpop.f32.mrb[49].mxu0 }
 0x139   :  { %v705_v50 = vmax.f32 %v578_v38, 0.0 }
 0x13b   :  { %v2367_v40 = vpack.c.bf16 %v706_v52, %v705_v50  ;;  %v2218_v0 = vpop.f32.mrb[50].mxu0 }
 0x13c   :  { %v708_v48 = vmax.f32 %v2218_v0, 0.0  ;;  %v588_v42 = vpop.f32.mrb[51].mxu0 }
 0x13d   :  { %v707_v39 = vmax.f32 %v588_v42, 0.0  ;;  %2368 = vmatprep.subr.bf16.mxu1 %v2367_v40 }
 0x13e   :  { %2370 = vmatpush3.bf16.msra.mxu1 %v2369_v54 }
 0x13f   :  { %v2371_v46 = vpack.c.bf16 %v708_v48, %v707_v39  ;;  %v2221_v47 = vpop.f32.mrb[52].mxu0 }
 0x140   :  { %v710_v51 = vmax.f32 %v2221_v47, 0.0  ;;  %v598_v43 = vpop.f32.mrb[53].mxu0 }
 0x141   :  { %v709_v63 = vmax.f32 %v598_v43, 0.0  ;;  %2372 = vmatprep.subr.bf16.mxu1 %v2371_v46 }
 0x142   :  { %2374 = vmatpush3.bf16.msra.mxu1 %v2373_v45 }
 0x143   :  { %v2375_v60 = vpack.c.bf16 %v710_v51, %v709_v63  ;;  %v2224_v58 = vpop.f32.mrb[54].mxu0 }
 0x144   :  { %v712_v59 = vmax.f32 %v2224_v58, 0.0  ;;  %v608_v57 = vpop.f32.mrb[55].mxu0 }
 0x145   :  { %v711_v41 = vmax.f32 %v608_v57, 0.0  ;;  %2376 = vmatprep.subr.bf16.mxu1 %v2375_v60  ;;  %v1802_v57 = vld [vmem:[%s3103_s0 + $0x8] sm:$0xff] }
 0x146   :  { %2378 = vmatpush3.bf16.msra.mxu1 %v2377_v53 }
 0x147   :  { %v2379_v38 = vpack.c.bf16 %v712_v59, %v711_v41  ;;  %v2227_v56 = vpop.f32.mrb[56].mxu0 }
 0x148   :  { %v714_v52 = vmax.f32 %v2227_v56, 0.0  ;;  %v618_v42 = vpop.f32.mrb[57].mxu0 }
 0x149   :  { %v713_v50 = vmax.f32 %v618_v42, 0.0  ;;  %2380 = vmatprep.subr.bf16.mxu1 %v2379_v38 }
 0x14a   :  { %2382 = vmatpush3.bf16.msra.mxu1 %v2381_v49 }
 0x14b   :  { %v2383_v54 = vpack.c.bf16 %v714_v52, %v713_v50  ;;  %v2230_v40 = vpop.f32.mrb[58].mxu0 }
 0x14c   :  { %v716_v0 = vmax.f32 %v2230_v40, 0.0  ;;  %v628_v48 = vpop.f32.mrb[59].mxu0 }
 0x14d   :  { %v715_v39 = vmax.f32 %v628_v48, 0.0  ;;  %2384 = vmatprep.subr.bf16.mxu1 %v2383_v54 }
 0x14e   :  { %2386 = vmatpush3.bf16.msra.mxu1 %v2385_v61  ;;  %v2963_v61 = vld [vmem:[%s3105_s2 + $0x10] sm:$0xff] }
 0x14f   :  { %v2387_v45 = vpack.c.bf16 %v716_v0, %v715_v39  ;;  %v2233_v46 = vpop.f32.mrb[60].mxu0 }
 0x150   :  { %v718_v47 = vmax.f32 %v2233_v46, 0.0  ;;  %v638_v51 = vpop.f32.mrb[61].mxu0 }
 0x151   :  { %v717_v43 = vmax.f32 %v638_v51, 0.0  ;;  %2388 = vmatprep.subr.bf16.mxu1 %v2387_v45 }
 0x152   :  { %2390 = vmatpush3.bf16.msra.mxu1 %v2389_v44 }
 0x153   :  { %v2391_v53 = vpack.c.bf16 %v718_v47, %v717_v43  ;;  %v2236_v63 = vpop.f32.mrb[62].mxu0 }
 0x154   :  { %v720_v60 = vmax.f32 %v2236_v63, 0.0  ;;  %v648_v58 = vpop.f32.mrb[63].mxu0 }
 0x155   :  { %v719_v59 = vmax.f32 %v648_v58, 0.0  ;;  %2392 = vmatprep.subr.bf16.mxu1 %v2391_v53 }
 0x156   :  { %2394 = vmatpush3.bf16.msra.mxu1 %v2393_v62 }
 0x157   :  { %v2395_v49 = vpack.c.bf16 %v720_v60, %v719_v59 }
 0x159   :  { %2396 = vmatprep.subr.bf16.mxu1 %v2395_v49 }
 0x15a   :  { %2398 = vmatpush3.bf16.msra.mxu1 %v2397_v55 }
 0x15b   :  { %2237 = vmatprep.subr.mxu1 %v1802_v57 }
 0x15d   :  { %860 = vmatmul.mubr.f32.vlgmr.msra.gmra.mrb[2].mxu1 %v2963_v61 }
 0x15e   :  { %2238 = vmatpush3.msra.mxu1 %v1802_v57  ;;  %2239 = vmatprep.mubr.msk.f32.mxu1 %vm79_vm0, %v2497_v1  ;;  %v3165_v1 = vld [vmem:[#allocation2_spill] sm:$0xff] }
 0x161   :  { %2240 = vmatmul.mubr.msk.f32.vlgmr.msra.gmra.mrb[4].mxu1 %vm79_vm0, %v2502_v2  ;;  %v3166_v2 = vld [vmem:[#allocation3_spill] sm:$0xff] }
 0x162   :  { %2242 = vmatprep.mubr.msk.f32.mxu1 %vm79_vm0, %v2509_v3  ;;  %v3167_v3 = vld [vmem:[#allocation4_spill] sm:$0xff] }
 0x165   :  { %2243 = vmatmul.mubr.msk.f32.gmra.mrb[6].mxu1 %vm79_vm0, %v2518_v4  ;;  %v3168_v4 = vld [vmem:[#allocation5_spill] sm:$0xff] }
 0x166   :  { %2245 = vmatprep.mubr.msk.f32.mxu1 %vm79_vm0, %v2523_v5  ;;  %v3169_v5 = vld [vmem:[#allocation6_spill] sm:$0xff] }
 0x169   :  { %2246 = vmatmul.mubr.msk.f32.gmra.mrb[8].mxu1 %vm79_vm0, %v2532_v6  ;;  %v3170_v6 = vld [vmem:[#allocation7_spill] sm:$0xff] }
 0x16a   :  { %2248 = vmatprep.mubr.msk.f32.mxu1 %vm79_vm0, %v2537_v7  ;;  %v3171_v7 = vld [vmem:[#allocation8_spill] sm:$0xff] }
 0x16d   :  { %2249 = vmatmul.mubr.msk.f32.gmra.mrb[10].mxu1 %vm79_vm0, %v2546_v8  ;;  %v3172_v8 = vld [vmem:[#allocation9_spill] sm:$0xff] }
 0x16e   :  { %2251 = vmatprep.mubr.msk.f32.mxu1 %vm79_vm0, %v2551_v9  ;;  %v3173_v9 = vld [vmem:[#allocation10_spill] sm:$0xff] }
 0x171   :  { %2252 = vmatmul.mubr.msk.f32.gmra.mrb[12].mxu1 %vm79_vm0, %v2560_v10  ;;  %v3174_v10 = vld [vmem:[#allocation11_spill] sm:$0xff] }
 0x172   :  { %2254 = vmatprep.mubr.msk.f32.mxu1 %vm79_vm0, %v2565_v11  ;;  %v3175_v11 = vld [vmem:[#allocation12_spill] sm:$0xff] }
 0x175   :  { %2255 = vmatmul.mubr.msk.f32.gmra.mrb[14].mxu1 %vm79_vm0, %v2574_v12  ;;  %v3176_v12 = vld [vmem:[#allocation13_spill] sm:$0xff] }
 0x176   :  { %2257 = vmatprep.mubr.msk.f32.mxu1 %vm79_vm0, %v2579_v13  ;;  %v3177_v13 = vld [vmem:[#allocation14_spill] sm:$0xff] }
 0x179   :  { %2258 = vmatmul.mubr.msk.f32.gmra.mrb[16].mxu1 %vm79_vm0, %v2588_v14  ;;  %v3178_v14 = vld [vmem:[#allocation15_spill] sm:$0xff] }
 0x17a   :  { %2260 = vmatprep.mubr.msk.f32.mxu1 %vm79_vm0, %v2593_v15  ;;  %v3179_v15 = vld [vmem:[#allocation16_spill] sm:$0xff] }
 0x17d   :  { %2261 = vmatmul.mubr.msk.f32.gmra.mrb[18].mxu1 %vm79_vm0, %v2602_v16  ;;  %v3180_v16 = vld [vmem:[#allocation17_spill] sm:$0xff] }
 0x17e   :  { %2263 = vmatprep.mubr.msk.f32.mxu1 %vm79_vm0, %v2607_v17  ;;  %v3181_v17 = vld [vmem:[#allocation18_spill] sm:$0xff] }
 0x181   :  { %2264 = vmatmul.mubr.msk.f32.gmra.mrb[20].mxu1 %vm79_vm0, %v2616_v18  ;;  %v3182_v18 = vld [vmem:[#allocation19_spill] sm:$0xff] }
 0x182   :  { %2266 = vmatprep.mubr.msk.f32.mxu1 %vm79_vm0, %v2621_v19  ;;  %v3183_v19 = vld [vmem:[#allocation20_spill] sm:$0xff] }
 0x185   :  { %2267 = vmatmul.mubr.msk.f32.gmra.mrb[22].mxu1 %vm79_vm0, %v2630_v20  ;;  %v3184_v20 = vld [vmem:[#allocation21_spill] sm:$0xff] }
 0x186   :  { %2269 = vmatprep.mubr.msk.f32.mxu1 %vm79_vm0, %v2635_v21  ;;  %v3185_v21 = vld [vmem:[#allocation22_spill] sm:$0xff] }
 0x189   :  { %2270 = vmatmul.mubr.msk.f32.gmra.mrb[24].mxu1 %vm79_vm0, %v2644_v22  ;;  %v3186_v22 = vld [vmem:[#allocation23_spill] sm:$0xff] }
 0x18a   :  { %2272 = vmatprep.mubr.msk.f32.mxu1 %vm79_vm0, %v2649_v23  ;;  %v3187_v23 = vld [vmem:[#allocation24_spill] sm:$0xff] }
 0x18d   :  { %2273 = vmatmul.mubr.msk.f32.gmra.mrb[26].mxu1 %vm79_vm0, %v2658_v24  ;;  %v3188_v24 = vld [vmem:[#allocation25_spill] sm:$0xff] }
 0x18e   :  { %2275 = vmatprep.mubr.msk.f32.mxu1 %vm79_vm0, %v2663_v25  ;;  %v3189_v25 = vld [vmem:[#allocation26_spill] sm:$0xff] }
 0x191   :  { %2276 = vmatmul.mubr.msk.f32.gmra.mrb[28].mxu1 %vm79_vm0, %v2672_v26  ;;  %v3190_v26 = vld [vmem:[#allocation27_spill] sm:$0xff] }
 0x192   :  { %2278 = vmatprep.mubr.msk.f32.mxu1 %vm79_vm0, %v2677_v27  ;;  %v3191_v27 = vld [vmem:[#allocation28_spill] sm:$0xff] }
 0x195   :  { %2279 = vmatmul.mubr.msk.f32.gmra.mrb[30].mxu1 %vm79_vm0, %v2686_v28 }
 0x196   :  { %2281 = vmatprep.mubr.msk.f32.mxu1 %vm79_vm0, %v2691_v29 }
 0x199   :  { %2282 = vmatmul.mubr.msk.f32.gmra.mrb[32].mxu1 %vm79_vm0, %v2700_v30 }
 0x19a   :  { %2284 = vmatprep.mubr.msk.f32.mxu1 %vm79_vm0, %v2705_v31 }
 0x19d   :  { %2285 = vmatmul.mubr.msk.f32.gmra.mrb[34].mxu1 %vm79_vm0, %v2714_v32 }
 0x19e   :  { %2287 = vmatprep.mubr.msk.f32.mxu1 %vm79_vm0, %v2719_v33 }
 0x1a1   :  { %2288 = vmatmul.mubr.msk.f32.gmra.mrb[36].mxu1 %vm79_vm0, %v2728_v34 }
 0x1a2   :  { %2290 = vmatprep.mubr.msk.f32.mxu1 %vm79_vm0, %v2733_v35 }
 0x1a5   :  { %2291 = vmatmul.mubr.msk.f32.gmra.mrb[38].mxu1 %vm79_vm0, %v2742_v36 }
 0x1a6   :  { %2293 = vmatprep.mubr.msk.f32.mxu1 %vm79_vm0, %v2747_v37 }
 0x1a9   :  { %2294 = vmatmul.mubr.msk.f32.gmra.mrb[40].mxu1 %vm79_vm0, %v3165_v1 }
 0x1aa   :  { %2296 = vmatprep.mubr.msk.f32.mxu1 %vm79_vm0, %v3166_v2 }
 0x1ad   :  { %2297 = vmatmul.mubr.msk.f32.gmra.mrb[42].mxu1 %vm79_vm0, %v3167_v3 }
 0x1ae   :  { %2299 = vmatprep.mubr.msk.f32.mxu1 %vm79_vm0, %v3168_v4 }
 0x1b1   :  { %2300 = vmatmul.mubr.msk.f32.gmra.mrb[44].mxu1 %vm79_vm0, %v3169_v5 }
 0x1b2   :  { %2302 = vmatprep.mubr.msk.f32.mxu1 %vm79_vm0, %v3170_v6 }
 0x1b5   :  { %2303 = vmatmul.mubr.msk.f32.gmra.mrb[46].mxu1 %vm79_vm0, %v3171_v7 }
 0x1b6   :  { %2305 = vmatprep.mubr.msk.f32.mxu1 %vm79_vm0, %v3172_v8 }
 0x1b9   :  { %2306 = vmatmul.mubr.msk.f32.gmra.mrb[48].mxu1 %vm79_vm0, %v3173_v9 }
 0x1ba   :  { %2308 = vmatprep.mubr.msk.f32.mxu1 %vm79_vm0, %v3174_v10 }
 0x1bd   :  { %2309 = vmatmul.mubr.msk.f32.gmra.mrb[50].mxu1 %vm79_vm0, %v3175_v11 }
 0x1be   :  { %2311 = vmatprep.mubr.msk.f32.mxu1 %vm79_vm0, %v3176_v12 }
 0x1c1   :  { %2312 = vmatmul.mubr.msk.f32.gmra.mrb[52].mxu1 %vm79_vm0, %v3177_v13 }
 0x1c2   :  { %2314 = vmatprep.mubr.msk.f32.mxu1 %vm79_vm0, %v3178_v14 }
 0x1c5   :  { %2315 = vmatmul.mubr.msk.f32.gmra.mrb[54].mxu1 %vm79_vm0, %v3179_v15 }
 0x1c6   :  { %2317 = vmatprep.mubr.msk.f32.mxu1 %vm79_vm0, %v3180_v16 }
 0x1c9   :  { %2318 = vmatmul.mubr.msk.f32.gmra.mrb[56].mxu1 %vm79_vm0, %v3181_v17 }
 0x1ca   :  { %2320 = vmatprep.mubr.msk.f32.mxu1 %vm79_vm0, %v3182_v18 }
 0x1cd   :  { %2321 = vmatmul.mubr.msk.f32.gmra.mrb[58].mxu1 %vm79_vm0, %v3183_v19 }
 0x1ce   :  { %2323 = vmatprep.mubr.msk.f32.mxu1 %vm79_vm0, %v3184_v20 }
 0x1d1   :  { %2324 = vmatmul.mubr.msk.f32.gmra.mrb[60].mxu1 %vm79_vm0, %v3185_v21 }
 0x1d2   :  { %2326 = vmatprep.mubr.msk.f32.mxu1 %vm79_vm0, %v3186_v22 }
 0x1d5   :  { %2327 = vmatmul.mubr.msk.f32.gmra.mrb[62].mxu1 %vm79_vm0, %v3187_v23 }
 0x1d6   :  { %2329 = vmatprep.mubr.msk.f32.mxu1 %vm79_vm0, %v3188_v24 }
 0x1d9   :  { %2330 = vmatmul.mubr.msk.f32.gmra.mrb[64].mxu1 %vm79_vm0, %v3189_v25 }
 0x1da   :  { %2332 = vmatprep.mubr.msk.f32.mxu1 %vm79_vm0, %v3190_v26 }
 0x1dd   :  { %2333 = vmatmul.mubr.msk.f32.gmra.mrb[66].mxu1 %vm79_vm0, %v3191_v27 }
 0x1f0   :  { %v1966_v28 = vpop.f32.mrb[0].mxu1 }
 0x1f1   :  { %v1967_v29 = vpop.f32.mrb[1].mxu1 }
 0x1f2   :  { %v1968_v30 = vadd.f32 %v1967_v29, %v1966_v28 }
 0x230   :  { %v2001_v31 = vpop.f32.mrb[2].mxu1 }
 0x231   :  { %v2002_v32 = vpop.f32.mrb[3].mxu1 }
 0x232   :  { %v2003_v33 = vadd.f32 %v2002_v32, %v2001_v31 }
 0x234   :  { %v862_v34 = vadd.f32 %v2003_v33, %v1968_v30  ;;  %v2241_v35 = vpop.f32.mrb[4].mxu1 }
 0x235   :  { %v1517_v36 = vmax.f32 %v2241_v35, 0.0  ;;  %v1197_v37 = vpop.f32.mrb[5].mxu1 }
 0x236   :  { %v1801_v44 = vmul.f32 -1.442695, %v862_v34  ;;  %v1516_v62 = vmax.f32 %v1197_v37, 0.0 }
 0x238   :  { %2463 = vpow2.f32 %v1801_v44  ;;  %v2401_v55 = vpack.c.bf16 %v1517_v36, %v1516_v62  ;;  %v2244_v41 = vpop.f32.mrb[6].mxu1 }
 0x239   :  { %v1519_v38 = vmax.f32 %v2244_v41, 0.0  ;;  %v1207_v56 = vpop.f32.mrb[7].mxu1 }
 0x23a   :  { %v1518_v52 = vmax.f32 %v1207_v56, 0.0 }
 0x23c   :  { %v2405_v42 = vpack.c.bf16 %v1519_v38, %v1518_v52  ;;  %v2247_v50 = vpop.f32.mrb[8].mxu1 }
 0x23d   :  { %v1521_v54 = vmax.f32 %v2247_v50, 0.0  ;;  %v1217_v40 = vpop.f32.mrb[9].mxu1 }
 0x23e   :  { %v1520_v0 = vmax.f32 %v1217_v40, 0.0 }
 0x240   :  { %v2409_v48 = vpack.c.bf16 %v1521_v54, %v1520_v0  ;;  %v2250_v39 = vpop.f32.mrb[10].mxu1 }
 0x241   :  { %v1523_v45 = vmax.f32 %v2250_v39, 0.0  ;;  %v1227_v46 = vpop.f32.mrb[11].mxu1 }
 0x242   :  { %v2464_v47 = vpop.eup %2463  ;;  %v1522_v51 = vmax.f32 %v1227_v46, 0.0 }
 0x243   :  { %v868_v43 = vadd.f32 1.0, %v2464_v47 }
 0x244   :  { %v2413_v53 = vpack.c.bf16 %v1523_v45, %v1522_v51  ;;  %v2253_v63 = vpop.f32.mrb[12].mxu1 }
 0x245   :  { %2465 = vrcp.f32 %v868_v43  ;;  %v1525_v60 = vmax.f32 %v2253_v63, 0.0  ;;  %v1237_v58 = vpop.f32.mrb[13].mxu1 }
 0x246   :  { %v1524_v59 = vmax.f32 %v1237_v58, 0.0 }
 0x248   :  { %v2417_v49 = vpack.c.bf16 %v1525_v60, %v1524_v59  ;;  %v2256_v57 = vpop.f32.mrb[14].mxu1 }
 0x249   :  { %v1527_v1 = vmax.f32 %v2256_v57, 0.0  ;;  %v1247_v2 = vpop.f32.mrb[15].mxu1 }
 0x24a   :  { %v1526_v3 = vmax.f32 %v1247_v2, 0.0 }
 0x24c   :  { %v2421_v4 = vpack.c.bf16 %v1527_v1, %v1526_v3  ;;  %v2259_v5 = vpop.f32.mrb[16].mxu1  ;;  %v3192_v3 = vld [vmem:[#allocation29_spill] sm:$0xff] }
 0x24d   :  { %v1529_v6 = vmax.f32 %v2259_v5, 0.0  ;;  %v1257_v7 = vpop.f32.mrb[17].mxu1 }
 0x24e   :  { %v1528_v8 = vmax.f32 %v1257_v7, 0.0 }
 0x24f   :  { %v2466_v9 = vpop.eup %2465 }
 0x250   :  { %v871_v10 = vmul.f32 16.0, %v2466_v9  ;;  %v2425_v11 = vpack.c.bf16 %v1529_v6, %v1528_v8  ;;  %v2262_v12 = vpop.f32.mrb[18].mxu1 }
 0x251   :  { %v1531_v13 = vmax.f32 %v2262_v12, 0.0  ;;  %v1267_v14 = vpop.f32.mrb[19].mxu1 }
 0x252   :  { %872 = vst [vmem:[%s3106_s3] sm:$0xff] %v871_v10  ;;  %v1530_v15 = vmax.f32 %v1267_v14, 0.0 }
 0x254   :  { %v2429_v16 = vpack.c.bf16 %v1531_v13, %v1530_v15  ;;  %v2265_v17 = vpop.f32.mrb[20].mxu1 }
 0x255   :  { %v1533_v18 = vmax.f32 %v2265_v17, 0.0  ;;  %v1277_v19 = vpop.f32.mrb[21].mxu1 }
 0x256   :  { %v1532_v20 = vmax.f32 %v1277_v19, 0.0 }
 0x258   :  { %v2399_v21 = vpack.c.bf16 %v1533_v18, %v1532_v20  ;;  %v2268_v22 = vpop.f32.mrb[22].mxu1 }
 0x259   :  { %v1535_v23 = vmax.f32 %v2268_v22, 0.0  ;;  %v1287_v24 = vpop.f32.mrb[23].mxu1 }
 0x25a   :  { %v1534_v25 = vmax.f32 %v1287_v24, 0.0  ;;  %2400 = vmatprep.subr.bf16.mxu0 %v2399_v21 }
 0x25b   :  { %2402 = vmatpush3.bf16.msra.mxu0 %v2401_v55 }
 0x25c   :  { %v2403_v26 = vpack.c.bf16 %v1535_v23, %v1534_v25  ;;  %v2271_v27 = vpop.f32.mrb[24].mxu1 }
 0x25d   :  { %v1537_v28 = vmax.f32 %v2271_v27, 0.0  ;;  %v1297_v29 = vpop.f32.mrb[25].mxu1 }
 0x25e   :  { %v1536_v30 = vmax.f32 %v1297_v29, 0.0  ;;  %2404 = vmatprep.subr.bf16.mxu0 %v2403_v26 }
 0x25f   :  { %2406 = vmatpush3.bf16.msra.mxu0 %v2405_v42 }
 0x260   :  { %v2407_v31 = vpack.c.bf16 %v1537_v28, %v1536_v30  ;;  %v2274_v32 = vpop.f32.mrb[26].mxu1 }
 0x261   :  { %v1539_v33 = vmax.f32 %v2274_v32, 0.0  ;;  %v1307_v34 = vpop.f32.mrb[27].mxu1 }
 0x262   :  { %v1538_v35 = vmax.f32 %v1307_v34, 0.0  ;;  %2408 = vmatprep.subr.bf16.mxu0 %v2407_v31 }
 0x263   :  { %2410 = vmatpush3.bf16.msra.mxu0 %v2409_v48 }
 0x264   :  { %v2411_v36 = vpack.c.bf16 %v1539_v33, %v1538_v35  ;;  %v2277_v37 = vpop.f32.mrb[28].mxu1 }
 0x265   :  { %v1541_v44 = vmax.f32 %v2277_v37, 0.0  ;;  %v1317_v62 = vpop.f32.mrb[29].mxu1 }
 0x266   :  { %v1540_v41 = vmax.f32 %v1317_v62, 0.0  ;;  %2412 = vmatprep.subr.bf16.mxu0 %v2411_v36 }
 0x267   :  { %2414 = vmatpush3.bf16.msra.mxu0 %v2413_v53 }
 0x268   :  { %v2415_v55 = vpack.c.bf16 %v1541_v44, %v1540_v41  ;;  %v2280_v38 = vpop.f32.mrb[30].mxu1 }
 0x269   :  { %v1543_v56 = vmax.f32 %v2280_v38, 0.0  ;;  %v1327_v52 = vpop.f32.mrb[31].mxu1 }
 0x26a   :  { %v1542_v50 = vmax.f32 %v1327_v52, 0.0  ;;  %2416 = vmatprep.subr.bf16.mxu0 %v2415_v55 }
 0x26b   :  { %2418 = vmatpush3.bf16.msra.mxu0 %v2417_v49 }
 0x26c   :  { %v2419_v42 = vpack.c.bf16 %v1543_v56, %v1542_v50  ;;  %v2283_v54 = vpop.f32.mrb[32].mxu1 }
 0x26d   :  { %v1545_v40 = vmax.f32 %v2283_v54, 0.0  ;;  %v1337_v0 = vpop.f32.mrb[33].mxu1 }
 0x26e   :  { %v1544_v39 = vmax.f32 %v1337_v0, 0.0  ;;  %2420 = vmatprep.subr.bf16.mxu0 %v2419_v42 }
 0x26f   :  { %2422 = vmatpush3.bf16.msra.mxu0 %v2421_v4  ;;  %v3193_v4 = vld [vmem:[#allocation30_spill] sm:$0xff] }
 0x270   :  { %v2423_v48 = vpack.c.bf16 %v1545_v40, %v1544_v39  ;;  %v2286_v45 = vpop.f32.mrb[34].mxu1 }
 0x271   :  { %v1547_v46 = vmax.f32 %v2286_v45, 0.0  ;;  %v1347_v47 = vpop.f32.mrb[35].mxu1 }
 0x272   :  { %v1546_v51 = vmax.f32 %v1347_v47, 0.0  ;;  %2424 = vmatprep.subr.bf16.mxu0 %v2423_v48 }
 0x273   :  { %2426 = vmatpush3.bf16.msra.mxu0 %v2425_v11 }
 0x274   :  { %v2427_v43 = vpack.c.bf16 %v1547_v46, %v1546_v51  ;;  %v2289_v53 = vpop.f32.mrb[36].mxu1 }
 0x275   :  { %v1549_v63 = vmax.f32 %v2289_v53, 0.0  ;;  %v1357_v60 = vpop.f32.mrb[37].mxu1 }
 0x276   :  { %2428 = vmatprep.subr.bf16.mxu0 %v2427_v43  ;;  %v1548_v58 = vmax.f32 %v1357_v60, 0.0 }
 0x277   :  { %2430 = vmatpush3.bf16.msra.mxu0 %v2429_v16 }
 0x278   :  { %v2433_v59 = vpack.c.bf16 %v1549_v63, %v1548_v58  ;;  %v2292_v49 = vpop.f32.mrb[38].mxu1 }
 0x279   :  { %v1551_v57 = vmax.f32 %v2292_v49, 0.0  ;;  %v1367_v1 = vpop.f32.mrb[39].mxu1 }
 0x27a   :  { %v1550_v2 = vmax.f32 %v1367_v1, 0.0  ;;  %1649 = vmatmul.mubr.f32.vlgmr.msra.gmra.mrb[64].mxu0 %v3192_v3 }
 0x27b   :  { %1718 = vmatprep.mubr.f32.mxu0 %v3193_v4 }
 0x27c   :  { %v2437_v5 = vpack.c.bf16 %v1551_v57, %v1550_v2  ;;  %v2295_v6 = vpop.f32.mrb[40].mxu1 }
 0x27d   :  { %v1553_v7 = vmax.f32 %v2295_v6, 0.0  ;;  %v1377_v8 = vpop.f32.mrb[41].mxu1 }
 0x27e   :  { %v1552_v9 = vmax.f32 %v1377_v8, 0.0 }
 0x280   :  { %v2441_v10 = vpack.c.bf16 %v1553_v7, %v1552_v9  ;;  %v2298_v11 = vpop.f32.mrb[42].mxu1 }
 0x281   :  { %v1555_v12 = vmax.f32 %v2298_v11, 0.0  ;;  %v1387_v13 = vpop.f32.mrb[43].mxu1 }
 0x282   :  { %v1554_v14 = vmax.f32 %v1387_v13, 0.0 }
 0x284   :  { %v2445_v15 = vpack.c.bf16 %v1555_v12, %v1554_v14  ;;  %v2301_v16 = vpop.f32.mrb[44].mxu1 }
 0x285   :  { %v1557_v17 = vmax.f32 %v2301_v16, 0.0  ;;  %v1397_v18 = vpop.f32.mrb[45].mxu1 }
 0x286   :  { %v1556_v19 = vmax.f32 %v1397_v18, 0.0 }
 0x288   :  { %v2449_v20 = vpack.c.bf16 %v1557_v17, %v1556_v19  ;;  %v2304_v21 = vpop.f32.mrb[46].mxu1 }
 0x289   :  { %v1559_v22 = vmax.f32 %v2304_v21, 0.0  ;;  %v1407_v23 = vpop.f32.mrb[47].mxu1 }
 0x28a   :  { %v1558_v24 = vmax.f32 %v1407_v23, 0.0 }
 0x28c   :  { %v2453_v25 = vpack.c.bf16 %v1559_v22, %v1558_v24  ;;  %v2307_v26 = vpop.f32.mrb[48].mxu1 }
 0x28d   :  { %v1561_v27 = vmax.f32 %v2307_v26, 0.0  ;;  %v1417_v28 = vpop.f32.mrb[49].mxu1 }
 0x28e   :  { %v1560_v29 = vmax.f32 %v1417_v28, 0.0 }
 0x290   :  { %v2457_v30 = vpack.c.bf16 %v1561_v27, %v1560_v29  ;;  %v2310_v31 = vpop.f32.mrb[50].mxu1 }
 0x291   :  { %v1563_v32 = vmax.f32 %v2310_v31, 0.0  ;;  %v1427_v33 = vpop.f32.mrb[51].mxu1 }
 0x292   :  { %v1562_v34 = vmax.f32 %v1427_v33, 0.0 }
 0x294   :  { %v2461_v35 = vpack.c.bf16 %v1563_v32, %v1562_v34  ;;  %v2313_v36 = vpop.f32.mrb[52].mxu1 }
 0x295   :  { %v1565_v37 = vmax.f32 %v2313_v36, 0.0  ;;  %v1437_v44 = vpop.f32.mrb[53].mxu1 }
 0x296   :  { %v1564_v62 = vmax.f32 %v1437_v44, 0.0 }
 0x298   :  { %v2431_v41 = vpack.c.bf16 %v1565_v37, %v1564_v62  ;;  %v2316_v55 = vpop.f32.mrb[54].mxu1 }
 0x299   :  { %v1567_v38 = vmax.f32 %v2316_v55, 0.0  ;;  %v1447_v56 = vpop.f32.mrb[55].mxu1 }
 0x29a   :  { %v1566_v52 = vmax.f32 %v1447_v56, 0.0  ;;  %2432 = vmatprep.subr.bf16.mxu0 %v2431_v41 }
 0x29b   :  { %2434 = vmatpush3.bf16.msra.mxu0 %v2433_v59 }
 0x29c   :  { %v2435_v50 = vpack.c.bf16 %v1567_v38, %v1566_v52  ;;  %v2319_v42 = vpop.f32.mrb[56].mxu1 }
 0x29d   :  { %v1569_v54 = vmax.f32 %v2319_v42, 0.0  ;;  %v1457_v40 = vpop.f32.mrb[57].mxu1 }
 0x29e   :  { %v1568_v0 = vmax.f32 %v1457_v40, 0.0  ;;  %2436 = vmatprep.subr.bf16.mxu0 %v2435_v50 }
 0x29f   :  { %2438 = vmatpush3.bf16.msra.mxu0 %v2437_v5 }
 0x2a0   :  { %v2439_v39 = vpack.c.bf16 %v1569_v54, %v1568_v0  ;;  %v2322_v48 = vpop.f32.mrb[58].mxu1 }
 0x2a1   :  { %v1571_v45 = vmax.f32 %v2322_v48, 0.0  ;;  %v1467_v46 = vpop.f32.mrb[59].mxu1 }
 0x2a2   :  { %v1570_v47 = vmax.f32 %v1467_v46, 0.0  ;;  %2440 = vmatprep.subr.bf16.mxu0 %v2439_v39 }
 0x2a3   :  { %2442 = vmatpush3.bf16.msra.mxu0 %v2441_v10 }
 0x2a4   :  { %v2443_v51 = vpack.c.bf16 %v1571_v45, %v1570_v47  ;;  %v2325_v43 = vpop.f32.mrb[60].mxu1 }
 0x2a5   :  { %v1573_v53 = vmax.f32 %v2325_v43, 0.0  ;;  %v1477_v63 = vpop.f32.mrb[61].mxu1 }
 0x2a6   :  { %v1572_v60 = vmax.f32 %v1477_v63, 0.0  ;;  %2444 = vmatprep.subr.bf16.mxu0 %v2443_v51 }
 0x2a7   :  { %2446 = vmatpush3.bf16.msra.mxu0 %v2445_v15 }
 0x2a8   :  { %v2447_v58 = vpack.c.bf16 %v1573_v53, %v1572_v60  ;;  %v2328_v59 = vpop.f32.mrb[62].mxu1 }
 0x2a9   :  { %v1575_v49 = vmax.f32 %v2328_v59, 0.0  ;;  %v1487_v57 = vpop.f32.mrb[63].mxu1 }
 0x2aa   :  { %v1574_v1 = vmax.f32 %v1487_v57, 0.0  ;;  %2448 = vmatprep.subr.bf16.mxu0 %v2447_v58 }
 0x2ab   :  { %2450 = vmatpush3.bf16.msra.mxu0 %v2449_v20 }
 0x2ac   :  { %v2451_v2 = vpack.c.bf16 %v1575_v49, %v1574_v1  ;;  %v2331_v3 = vpop.f32.mrb[64].mxu1 }
 0x2ad   :  { %v1577_v4 = vmax.f32 %v2331_v3, 0.0  ;;  %v1497_v5 = vpop.f32.mrb[65].mxu1 }
 0x2ae   :  { %v1576_v6 = vmax.f32 %v1497_v5, 0.0  ;;  %2452 = vmatprep.subr.bf16.mxu0 %v2451_v2 }
 0x2af   :  { %2454 = vmatpush3.bf16.msra.mxu0 %v2453_v25 }
 0x2b0   :  { %v2455_v7 = vpack.c.bf16 %v1577_v4, %v1576_v6  ;;  %v2334_v8 = vpop.f32.mrb[66].mxu1 }
 0x2b1   :  { %v1579_v9 = vmax.f32 %v2334_v8, 0.0  ;;  %v1507_v10 = vpop.f32.mrb[67].mxu1 }
 0x2b2   :  { %v1578_v11 = vmax.f32 %v1507_v10, 0.0  ;;  %2456 = vmatprep.subr.bf16.mxu0 %v2455_v7 }
 0x2b3   :  { %2458 = vmatpush3.bf16.msra.mxu0 %v2457_v30 }
 0x2b4   :  { %v2459_v12 = vpack.c.bf16 %v1579_v9, %v1578_v11 }
 0x2b6   :  { %2460 = vmatprep.subr.bf16.mxu0 %v2459_v12 }
 0x2b7   :  { %2462 = vmatpush3.bf16.msra.mxu0 %v2461_v35 }
 0x2ba   :  { %1719 = vmatmul.mubr.f32.vlgmr.msra.gmra.mrb[66].mxu0 %v2963_v61 }
 0x34d   :  { %v2101_v13 = vpop.f32.mrb[64].mxu0 }
 0x34e   :  { %v2102_v14 = vpop.f32.mrb[65].mxu0 }
 0x34f   :  { %v2103_v15 = vadd.f32 %v2102_v14, %v2101_v13 }
 0x38d   :  { %v2136_v16 = vpop.f32.mrb[66].mxu0 }
 0x38e   :  { %v2137_v17 = vpop.f32.mrb[67].mxu0 }
 0x38f   :  { %v2138_v18 = vadd.f32 %v2137_v17, %v2136_v16 }
 0x391   :  { %v1721_v19 = vadd.f32 %v2138_v18, %v2103_v15 }
 0x393   :  { %v1867_v20 = vmul.f32 -1.442695, %v1721_v19 }
 0x395   :  { %2467 = vpow2.f32 %v1867_v20 }
 0x39f   :  { %v2468_v21 = vpop.eup %2467 }
 0x3a0   :  { %v1727_v22 = vadd.f32 1.0, %v2468_v21 }
 0x3a2   :  { %2469 = vrcp.f32 %v1727_v22 }
 0x3ac   :  { %v2470_v23 = vpop.eup %2469 }
 0x3ad   :  { %v1730_v24 = vmul.f32 16.0, %v2470_v23 }
 0x3af   :  { %1868 = vst [vmem:[%s3106_s3 + $0x8] sm:$0xff] %v1730_v24 }

</bundles_post_ra>
